<compile_context>
chip_gen: v7x
topology: tpu7x:2x2x1
jax: 0.10.0
libtpu: 0.0.40
codegen_flags: <defaults>
</compile_context>

<pallas_src>
import functools

import jax
import jax.numpy as jnp
from jax.experimental import pallas as pl
from jax.experimental.pallas import tpu as pltpu


def _sender_kernel(x_ref, w1_ref, b1_ref, wh_ref, bh_ref, out_ref):
    # fc1: bf16 operands into the MXU, f32 accumulate, f32 epilogue (bias+ReLU).
    x = x_ref[...].astype(w1_ref.dtype)
    h = jnp.dot(x, w1_ref[...], preferred_element_type=jnp.float32)
    h = jnp.maximum(h + b1_ref[...], 0.0)

    # Fused heads fc21|fc22 (lane-padded): one (hid, msg2_pad) matmul,
    # f32 accumulate, f32 bias, lane-dense store.
    y = jnp.dot(h.astype(wh_ref.dtype), wh_ref[...],
                preferred_element_type=jnp.float32)
    out_ref[...] = (y + bh_ref[...]).astype(out_ref.dtype)


def prepare_sender_params(w1, b1, w21, b21, w22, b22,
                          *, weight_dtype=jnp.bfloat16):
    """One-time layout/dtype conversion (call once at model setup, NOT per-forward).

    Inputs use PyTorch layout: weights (out_features, in_features), biases (out,).
    Returns:
      w1 : (784, 400)       bf16
      b1 : (1, 400)         f32
      wh : (400, msg2_pad)  bf16   -- [W21^T | W22^T | zero-pad] with
                                      msg2_pad = 128 * ceil(2*msg / 128)
      bh : (1, msg2_pad)    f32    -- [b21 | b22 | zeros]
    """
    w1_t = jnp.asarray(w1).T.astype(weight_dtype)                       # (784, 400)

    wh = jnp.concatenate([jnp.asarray(w21).T, jnp.asarray(w22).T],
                         axis=1).astype(jnp.float32)                    # (400, 2*msg)
    bh = jnp.concatenate([jnp.asarray(b21), jnp.asarray(b22)]
                         ).astype(jnp.float32).reshape(1, -1)           # (1, 2*msg)

    msg2 = wh.shape[1]
    msg2_pad = max(128, ((msg2 + 127) // 128) * 128)
    if msg2_pad != msg2:
        wh = jnp.pad(wh, ((0, 0), (0, msg2_pad - msg2)))
        bh = jnp.pad(bh, ((0, 0), (0, msg2_pad - msg2)))

    return {
        "w1": w1_t,
        "b1": jnp.asarray(b1, jnp.float32).reshape(1, -1),              # (1, 400)
        "wh": wh.astype(weight_dtype),                                  # (400, msg2_pad)
        "bh": bh,                                                       # (1, msg2_pad)
    }


def _pick_block_b(B):
    # Tile the batch only when it is large enough to be worth grid-step
    # overhead / megacore sharding; otherwise single invocation.
    for blk in (256, 128):
        if B > blk and B % blk == 0:
            return blk
    return B


@functools.partial(jax.jit, static_argnames=("message_dim",))
def sender_forward(x, params, *, message_dim):
    """x: (B, 784) f32. params: output of prepare_sender_params."""
    w1, b1, wh, bh = params["w1"], params["b1"], params["wh"], params["bh"]
    B, in_dim = x.shape
    hid = w1.shape[1]
    msg2_pad = wh.shape[1]

    block_b = _pick_block_b(B)
    grid = (B // block_b,)

    flops = 2 * B * in_dim * hid + 2 * B * hid * msg2_pad
    bytes_accessed = (x.size * x.dtype.itemsize
                      + w1.size * w1.dtype.itemsize
                      + wh.size * wh.dtype.itemsize
                      + b1.size * b1.dtype.itemsize
                      + bh.size * bh.dtype.itemsize
                      + B * msg2_pad * x.dtype.itemsize)

    out = pl.pallas_call(
        _sender_kernel,
        out_shape=jax.ShapeDtypeStruct((B, msg2_pad), x.dtype),
        grid=grid,
        in_specs=[
            pl.BlockSpec((block_b, in_dim), lambda i: (i, 0)),   # x tile
            pl.BlockSpec((in_dim, hid), lambda i: (0, 0)),       # W1 (resident)
            pl.BlockSpec((1, hid), lambda i: (0, 0)),            # b1
            pl.BlockSpec((hid, msg2_pad), lambda i: (0, 0)),     # W21|W22 (resident)
            pl.BlockSpec((1, msg2_pad), lambda i: (0, 0)),       # b21|b22
        ],
        out_specs=pl.BlockSpec((block_b, msg2_pad), lambda i: (i, 0)),
        compiler_params=pltpu.CompilerParams(
            dimension_semantics=("parallel",),
            vmem_limit_bytes=8 << 20,
        ),
        cost_estimate=pl.CostEstimate(
            flops=flops, transcendentals=0, bytes_accessed=bytes_accessed),
    )(x, w1, b1, wh, bh)

    mu = out[:, :message_dim]
    logvar = out[:, message_dim:2 * message_dim]
    return mu, logvar


def _init_linear(key, out_features, in_features):
    """Deterministic init matching torch.nn.Linear default (U[-1/sqrt(fan_in), +])."""
    kw, kb = jax.random.split(key)
    bound = 1.0 / jnp.sqrt(in_features)
    w = jax.random.uniform(kw, (out_features, in_features), jnp.float32, -bound, bound)
    b = jax.random.uniform(kb, (out_features,), jnp.float32, -bound, bound)
    return w, b


if __name__ == "__main__":
    key = jax.random.PRNGKey(0)
    k_x, k1, k21, k22 = jax.random.split(key, 4)

    batch = 8
    message_dim = 32

    x = jax.random.normal(k_x, (batch, 784), jnp.float32)
    w1, b1 = _init_linear(k1, 400, 784)
    w21, b21 = _init_linear(k21, message_dim, 400)
    w22, b22 = _init_linear(k22, message_dim, 400)

    params = prepare_sender_params(w1, b1, w21, b21, w22, b22)

    mu, logvar = sender_forward(x, params, message_dim=message_dim)
    jax.block_until_ready((mu, logvar))

    assert mu.shape == (batch, message_dim)
    assert logvar.shape == (batch, message_dim)

    # Reference 1: same bf16-input / f32-accumulate path as the kernel (tight).
    bf = jnp.bfloat16
    xb = x.astype(bf)
    h_ref = jnp.maximum(
        jnp.dot(xb, w1.T.astype(bf), preferred_element_type=jnp.float32) + b1, 0.0)
    hb = h_ref.astype(bf)
    mu_ref = jnp.dot(hb, w21.T.astype(bf), preferred_element_type=jnp.float32) + b21
    lv_ref = jnp.dot(hb, w22.T.astype(bf), preferred_element_type=jnp.float32) + b22
    assert jnp.allclose(mu, mu_ref, atol=2e-3, rtol=2e-3)
    assert jnp.allclose(logvar, lv_ref, atol=2e-3, rtol=2e-3)

    # Reference 2: exact f32 PyTorch-equivalent math (loose, bf16-weight error budget).
    h_f32 = jnp.maximum(x @ w1.T + b1, 0.0)
    assert jnp.allclose(mu, h_f32 @ w21.T + b21, atol=5e-2, rtol=5e-2)
    assert jnp.allclose(logvar, h_f32 @ w22.T + b22, atol=5e-2, rtol=5e-2)

    print("KERNEL_OK")
</pallas_src>

<mosaic_0001>
module attributes {stable_mosaic.version = 11 : i64} {
  func.func @_sender_kernel(%arg0: i32, %arg1: memref<8x784xf32, #tpu.memory_space<vmem>>, %arg2: memref<784x400xbf16, #tpu.memory_space<vmem>>, %arg3: memref<1x400xf32, #tpu.memory_space<vmem>>, %arg4: memref<400x128xbf16, #tpu.memory_space<vmem>>, %arg5: memref<1x128xf32, #tpu.memory_space<vmem>>, %arg6: memref<8x128xf32, #tpu.memory_space<vmem>>) attributes {dimension_semantics = [#tpu.dimension_semantics<parallel>], iteration_bounds = array<i64: 1>, scalar_prefetch = 0 : i64, scratch_operands = 0 : i64, tpu.core_type = #tpu.core_type<tc>, window_params = [{transform_indices = @transform_0, window_bounds = array<i64: 8, 784>}, {pipeline_mode = #tpu.pipeline_mode<synchronous>, transform_indices = @transform_1, window_bounds = array<i64: 784, 400>}, {pipeline_mode = #tpu.pipeline_mode<synchronous>, transform_indices = @transform_2, window_bounds = array<i64: 1, 400>}, {pipeline_mode = #tpu.pipeline_mode<synchronous>, transform_indices = @transform_3, window_bounds = array<i64: 400, 128>}, {pipeline_mode = #tpu.pipeline_mode<synchronous>, transform_indices = @transform_4, window_bounds = array<i64: 1, 128>}, {transform_indices = @transform_5, window_bounds = array<i64: 8, 128>}]} {
    %c0 = arith.constant 0 : index
    %c0_0 = arith.constant 0 : index
    %0 = vector.load %arg1[%c0, %c0_0] : memref<8x784xf32, #tpu.memory_space<vmem>>, vector<8x784xf32>
    %1 = arith.truncf %0 : vector<8x784xf32> to vector<8x784xbf16>
    %c0_1 = arith.constant 0 : index
    %c0_2 = arith.constant 0 : index
    %2 = vector.load %arg2[%c0_1, %c0_2] : memref<784x400xbf16, #tpu.memory_space<vmem>>, vector<784x400xbf16>
    %cst = arith.constant dense<0.000000e+00> : vector<8x400xf32>
    %3 = tpu.matmul %1, %2, %cst {dimension_numbers = #tpu.dot_dimension_numbers<[1], [0], [0], [1], [0, 0, 1, 1], [], []>} : vector<8x784xbf16>, vector<784x400xbf16>, vector<8x400xf32> -> vector<8x400xf32>
    %c0_3 = arith.constant 0 : index
    %c0_4 = arith.constant 0 : index
    %4 = vector.load %arg3[%c0_3, %c0_4] : memref<1x400xf32, #tpu.memory_space<vmem>>, vector<1x400xf32>
    %5 = vector.broadcast %4 : vector<1x400xf32> to vector<8x400xf32>
    %6 = arith.addf %3, %5 : vector<8x400xf32>
    %cst_5 = arith.constant 0.000000e+00 : f32
    %7 = vector.broadcast %cst_5 : f32 to vector<8x400xf32>
    %8 = arith.maximumf %6, %7 : vector<8x400xf32>
    %9 = arith.truncf %8 : vector<8x400xf32> to vector<8x400xbf16>
    %c0_6 = arith.constant 0 : index
    %c0_7 = arith.constant 0 : index
    %10 = vector.load %arg4[%c0_6, %c0_7] : memref<400x128xbf16, #tpu.memory_space<vmem>>, vector<400x128xbf16>
    %cst_8 = arith.constant dense<0.000000e+00> : vector<8x128xf32>
    %11 = tpu.matmul %9, %10, %cst_8 {dimension_numbers = #tpu.dot_dimension_numbers<[1], [0], [0], [1], [0, 0, 1, 1], [], []>} : vector<8x400xbf16>, vector<400x128xbf16>, vector<8x128xf32> -> vector<8x128xf32>
    %c0_9 = arith.constant 0 : index
    %c0_10 = arith.constant 0 : index
    %12 = vector.load %arg5[%c0_9, %c0_10] : memref<1x128xf32, #tpu.memory_space<vmem>>, vector<1x128xf32>
    %13 = vector.broadcast %12 : vector<1x128xf32> to vector<8x128xf32>
    %14 = arith.addf %11, %13 : vector<8x128xf32>
    %c0_11 = arith.constant 0 : index
    %c0_12 = arith.constant 0 : index
    %15 = vector.load %arg6[%c0_11, %c0_12] : memref<8x128xf32, #tpu.memory_space<vmem>>, vector<8x128xf32>
    tpu.vector_store %arg6[%c0_11, %c0_12], %14 {strides = array<i32>} : memref<8x128xf32, #tpu.memory_space<vmem>>, vector<8x128xf32>,
    return
  }
  func.func @transform_0(%arg0: i32) -> (i32, i32) {
    %c0_i32 = arith.constant 0 : i32
    %c0_i32_0 = arith.constant 0 : i32
    return %arg0, %c0_i32 : i32, i32
  }
  func.func @transform_1(%arg0: i32) -> (i32, i32) {
    %c0_i32 = arith.constant 0 : i32
    %c0_i32_0 = arith.constant 0 : i32
    %c0_i32_1 = arith.constant 0 : i32
    return %c0_i32, %c0_i32_0 : i32, i32
  }
  func.func @transform_2(%arg0: i32) -> (i32, i32) {
    %c0_i32 = arith.constant 0 : i32
    %c0_i32_0 = arith.constant 0 : i32
    %c0_i32_1 = arith.constant 0 : i32
    return %c0_i32, %c0_i32_0 : i32, i32
  }
  func.func @transform_3(%arg0: i32) -> (i32, i32) {
    %c0_i32 = arith.constant 0 : i32
    %c0_i32_0 = arith.constant 0 : i32
    %c0_i32_1 = arith.constant 0 : i32
    return %c0_i32, %c0_i32_0 : i32, i32
  }
  func.func @transform_4(%arg0: i32) -> (i32, i32) {
    %c0_i32 = arith.constant 0 : i32
    %c0_i32_0 = arith.constant 0 : i32
    %c0_i32_1 = arith.constant 0 : i32
    return %c0_i32, %c0_i32_0 : i32, i32
  }
  func.func @transform_5(%arg0: i32) -> (i32, i32) {
    %c0_i32 = arith.constant 0 : i32
    %c0_i32_0 = arith.constant 0 : i32
    return %arg0, %c0_i32 : i32, i32
  }
}

</mosaic_0001>

<bundles_post_ra>
// kernel: sender_forward.1
= control target key start
LH: loop header
LB: loop body
LE: loop exit
PB: predicated region body
PF: predicated region fallthrough
CT: control target
= control target key end

     0   :  { %vm1233_vm0 = vcmask 130048   ;;  %s3190_s1 = inlined_call_operand.vmem [shape: bf16[784,400], index: 1, kind: input, shape index: {}]   ;;  %s3191_s0 = inlined_call_operand.vmem [shape: f32[8,784], index: 0, kind: input, shape index: {}]   ;;  %s3192_s3 = inlined_call_operand.vmem [shape: bf16[400,128], index: 3, kind: input, shape index: {}]   ;;  %s3193_s2 = inlined_call_operand.vmem [shape: f32[1,400], index: 2, kind: input, shape index: {}]   ;;  %s3194_s4 = inlined_call_operand.vmem [shape: f32[1,128], index: 4, kind: input, shape index: {}]   ;;  %s3195_s5 = inlined_call_operand.vmem [shape: f32[8,128], index: 5, kind: output, shape index: {}]  }
   0x1   :  { %v2144_v0 = vld [vmem:[%s3190_s1 + $0x4] ss:$16 sps:$4 sm:$0xff]   ;;  %v2146_v1 = vld [vmem:[%s3190_s1 + $0xc] ss:$16 sps:$4 sm:$0xff]   ;;  %v2148_v2 = vld [vmem:[%s3190_s1] ss:$16 sps:$4 sm:$0xff]  }
   0x2   :  { %1237 = vmatprep.subr.bf16.mxu0 %v2144_v0  ;;  %v2149_v3 = vld [vmem:[%s3190_s1 + $0x8] ss:$16 sps:$4 sm:$0xff]   ;;  %1401 = vmatprep.subr.bf16.mxu1 %v2146_v1  ;;  %v2150_v4 = vld [vmem:[%s3190_s1 + $0x24] ss:$16 sps:$4 sm:$0xff]   ;;  %v2152_v5 = vld [vmem:[%s3190_s1 + $0x2c] ss:$16 sps:$4 sm:$0xff]  }
   0x3   :  { %1238 = vmatpush1.bf16.msra.mxu0 %v2148_v2  ;;  %1402 = vmatpush1.bf16.msra.mxu1 %v2149_v3  ;;  %v2154_v6 = vld [vmem:[%s3190_s1 + $0x20] ss:$16 sps:$4 sm:$0xff]   ;;  %v2155_v7 = vld [vmem:[%s3190_s1 + $0x28] ss:$16 sps:$4 sm:$0xff]   ;;  %v2156_v8 = vld [vmem:[%s3190_s1 + $0x44] ss:$16 sps:$4 sm:$0xff]  }
   0x4   :  { %1239 = vmatprep.subr.bf16.mxu0 %v2150_v4  ;;  %1403 = vmatprep.subr.bf16.mxu1 %v2152_v5  ;;  %v2158_v9 = vld [vmem:[%s3190_s1 + $0x4c] ss:$16 sps:$4 sm:$0xff]   ;;  %v2160_v10 = vld [vmem:[%s3190_s1 + $0x40] ss:$16 sps:$4 sm:$0xff]   ;;  %v2161_v11 = vld [vmem:[%s3190_s1 + $0x48] ss:$16 sps:$4 sm:$0xff]  }
   0x5   :  { %v2162_v12 = vld [vmem:[%s3190_s1 + $0x64] ss:$16 sps:$4 sm:$0xff]   ;;  %v2164_v13 = vld [vmem:[%s3190_s1 + $0x6c] ss:$16 sps:$4 sm:$0xff]   ;;  %v2166_v14 = vld [vmem:[%s3190_s1 + $0x60] ss:$16 sps:$4 sm:$0xff]  }
   0x6   :  { %v2167_v15 = vld [vmem:[%s3190_s1 + $0x68] ss:$16 sps:$4 sm:$0xff]   ;;  %v2168_v16 = vld [vmem:[%s3190_s1 + $0x84] ss:$16 sps:$4 sm:$0xff]   ;;  %v2170_v17 = vld [vmem:[%s3190_s1 + $0x8c] ss:$16 sps:$4 sm:$0xff]  }
   0x7   :  { %1240 = vmatpush1.bf16.msra.mxu0 %v2154_v6  ;;  %1404 = vmatpush1.bf16.msra.mxu1 %v2155_v7  ;;  %v2172_v18 = vld [vmem:[%s3190_s1 + $0x80] ss:$16 sps:$4 sm:$0xff]   ;;  %v2173_v19 = vld [vmem:[%s3190_s1 + $0x88] ss:$16 sps:$4 sm:$0xff]   ;;  %v2174_v20 = vld [vmem:[%s3190_s1 + $0xa4] ss:$16 sps:$4 sm:$0xff]  }
   0x8   :  { %1241 = vmatprep.subr.bf16.mxu0 %v2156_v8  ;;  %1405 = vmatprep.subr.bf16.mxu1 %v2158_v9  ;;  %v2176_v21 = vld [vmem:[%s3190_s1 + $0xac] ss:$16 sps:$4 sm:$0xff]   ;;  %v2178_v22 = vld [vmem:[%s3190_s1 + $0xa0] ss:$16 sps:$4 sm:$0xff]   ;;  %v2179_v23 = vld [vmem:[%s3190_s1 + $0xa8] ss:$16 sps:$4 sm:$0xff]  }
   0x9   :  { %v2180_v24 = vld [vmem:[%s3190_s1 + $0xc4] ss:$16 sps:$4 sm:$0xff]   ;;  %v2182_v25 = vld [vmem:[%s3190_s1 + $0xcc] ss:$16 sps:$4 sm:$0xff]   ;;  %v2184_v26 = vld [vmem:[%s3190_s1 + $0xc0] ss:$16 sps:$4 sm:$0xff]  }
   0xa   :  { %v2185_v27 = vld [vmem:[%s3190_s1 + $0xc8] ss:$16 sps:$4 sm:$0xff]   ;;  %v2186_v28 = vld [vmem:[%s3190_s1 + $0xe4] ss:$16 sps:$4 sm:$0xff]   ;;  %v2188_v29 = vld [vmem:[%s3190_s1 + $0xec] ss:$16 sps:$4 sm:$0xff]  }
   0xb   :  { %1242 = vmatpush1.bf16.msra.mxu0 %v2160_v10  ;;  %1406 = vmatpush1.bf16.msra.mxu1 %v2161_v11  ;;  %v2190_v30 = vld [vmem:[%s3190_s1 + $0xe0] ss:$16 sps:$4 sm:$0xff]   ;;  %v2191_v31 = vld [vmem:[%s3190_s1 + $0xe8] ss:$16 sps:$4 sm:$0xff]   ;;  %v2192_v32 = vld [vmem:[%s3190_s1 + $0x104] ss:$16 sps:$4 sm:$0xff]  }
   0xc   :  { %1243 = vmatprep.subr.bf16.mxu0 %v2162_v12  ;;  %1407 = vmatprep.subr.bf16.mxu1 %v2164_v13  ;;  %v2194_v33 = vld [vmem:[%s3190_s1 + $0x10c] ss:$16 sps:$4 sm:$0xff]   ;;  %v2196_v34 = vld [vmem:[%s3190_s1 + $0x100] ss:$16 sps:$4 sm:$0xff]   ;;  %v2197_v35 = vld [vmem:[%s3190_s1 + $0x108] ss:$16 sps:$4 sm:$0xff]  }
   0xd   :  { %v2198_v36 = vld [vmem:[%s3190_s1 + $0x124] ss:$16 sps:$4 sm:$0xff]   ;;  %v2200_v37 = vld [vmem:[%s3190_s1 + $0x12c] ss:$16 sps:$4 sm:$0xff]   ;;  %v2202_v38 = vld [vmem:[%s3190_s1 + $0x120] ss:$16 sps:$4 sm:$0xff]  }
   0xe   :  { %v2203_v39 = vld [vmem:[%s3190_s1 + $0x128] ss:$16 sps:$4 sm:$0xff]   ;;  %v2204_v40 = vld [vmem:[%s3190_s1 + $0x144] ss:$16 sps:$4 sm:$0xff]   ;;  %v2206_v41 = vld [vmem:[%s3190_s1 + $0x14c] ss:$16 sps:$4 sm:$0xff]  }
   0xf   :  { %1244 = vmatpush1.bf16.msra.mxu0 %v2166_v14  ;;  %1408 = vmatpush1.bf16.msra.mxu1 %v2167_v15  ;;  %v2208_v42 = vld [vmem:[%s3190_s1 + $0x140] ss:$16 sps:$4 sm:$0xff]   ;;  %v2209_v43 = vld [vmem:[%s3190_s1 + $0x148] ss:$16 sps:$4 sm:$0xff]   ;;  %v2210_v44 = vld [vmem:[%s3190_s1 + $0x164] ss:$16 sps:$4 sm:$0xff]  }
  0x10   :  { %1245 = vmatprep.subr.bf16.mxu0 %v2168_v16  ;;  %1409 = vmatprep.subr.bf16.mxu1 %v2170_v17  ;;  %v2212_v45 = vld [vmem:[%s3190_s1 + $0x16c] ss:$16 sps:$4 sm:$0xff]   ;;  %v2214_v47 = vld [vmem:[%s3190_s1 + $0x160] ss:$16 sps:$4 sm:$0xff]   ;;  %v2215_v49 = vld [vmem:[%s3190_s1 + $0x168] ss:$16 sps:$4 sm:$0xff]  }
  0x11   :  { %v22_v46 = vld [vmem:[%s3191_s0 + $0x8] sm:$0xff]  ;;  %v2216_v50 = vld [vmem:[%s3190_s1 + $0x184] ss:$16 sps:$4 sm:$0xff]   ;;  %v2220_v52 = vld [vmem:[%s3190_s1 + $0x180] ss:$16 sps:$4 sm:$0xff]  }
  0x12   :  { %v29_v48 = vpack.c.bf16 %v22_v46, %v22_v46  ;;  %v2218_v51 = vld [vmem:[%s3190_s1 + $0x18c] ss:$16 sps:$4 sm:$0xff]   ;;  %v2221_v53 = vld [vmem:[%s3190_s1 + $0x188] ss:$16 sps:$4 sm:$0xff]   ;;  %v2222_v54 = vld [vmem:[%s3190_s1 + $0x1a4] ss:$16 sps:$4 sm:$0xff]  }
  0x13   :  { %1246 = vmatpush1.bf16.msra.mxu0 %v2172_v18  ;;  %1410 = vmatpush1.bf16.msra.mxu1 %v2173_v19  ;;  %v2224_v55 = vld [vmem:[%s3190_s1 + $0x1ac] ss:$16 sps:$4 sm:$0xff]   ;;  %v2226_v56 = vld [vmem:[%s3190_s1 + $0x1a0] ss:$16 sps:$4 sm:$0xff]   ;;  %v2227_v57 = vld [vmem:[%s3190_s1 + $0x1a8] ss:$16 sps:$4 sm:$0xff]  }
  0x14   :  { %1247 = vmatprep.subr.bf16.mxu0 %v2174_v20  ;;  %1411 = vmatprep.subr.bf16.mxu1 %v2176_v21  ;;  %v2228_v58 = vld [vmem:[%s3190_s1 + $0x1c4] ss:$16 sps:$4 sm:$0xff]   ;;  %v2230_v59 = vld [vmem:[%s3190_s1 + $0x1cc] ss:$16 sps:$4 sm:$0xff]   ;;  %v2232_v60 = vld [vmem:[%s3190_s1 + $0x1c0] ss:$16 sps:$4 sm:$0xff]  }
  0x15   :  { %1269 = vmatprep.mubr.bf16.mxu0 %v29_v48  ;;  %1433 = vmatprep.mubr.bf16.mxu1 %v29_v48  ;;  %v2233_v61 = vld [vmem:[%s3190_s1 + $0x1c8] ss:$16 sps:$4 sm:$0xff]   ;;  %v2234_v62 = vld [vmem:[%s3190_s1 + $0x1e4] ss:$16 sps:$4 sm:$0xff]   ;;  %v2236_v63 = vld [vmem:[%s3190_s1 + $0x1ec] ss:$16 sps:$4 sm:$0xff]  }
  0x16   :  { %v2238_v0 = vld [vmem:[%s3190_s1 + $0x1e0] ss:$16 sps:$4 sm:$0xff]   ;;  %v2239_v1 = vld [vmem:[%s3190_s1 + $0x1e8] ss:$16 sps:$4 sm:$0xff]   ;;  %v2242_v3 = vld [vmem:[%s3190_s1 + $0x204] ss:$16 sps:$4 sm:$0xff]  }
  0x17   :  { %1248 = vmatpush1.bf16.msra.mxu0 %v2178_v22  ;;  %1412 = vmatpush1.bf16.msra.mxu1 %v2179_v23  ;;  %v21_v2 = vld [vmem:[%s3191_s0] sm:$0xff]  ;;  %v2245_v4 = vld [vmem:[%s3190_s1 + $0x20c] ss:$16 sps:$4 sm:$0xff]   ;;  %v2243_v7 = vld [vmem:[%s3190_s1 + $0x208] ss:$16 sps:$4 sm:$0xff]  }
  0x18   :  { %1249 = vmatprep.subr.bf16.mxu0 %v2180_v24  ;;  %1413 = vmatprep.subr.bf16.mxu1 %v2182_v25  ;;  %v28_v5 = vpack.c.bf16 %v21_v2, %v21_v2  ;;  %v2240_v6 = vld [vmem:[%s3190_s1 + $0x200] ss:$16 sps:$4 sm:$0xff]   ;;  %v2248_v8 = vld [vmem:[%s3190_s1 + $0x224] ss:$16 sps:$4 sm:$0xff]   ;;  %v2251_v9 = vld [vmem:[%s3190_s1 + $0x22c] ss:$16 sps:$4 sm:$0xff]  }
  0x19   :  { %v2246_v10 = vld [vmem:[%s3190_s1 + $0x220] ss:$16 sps:$4 sm:$0xff]   ;;  %v2249_v11 = vld [vmem:[%s3190_s1 + $0x228] ss:$16 sps:$4 sm:$0xff]   ;;  %v2254_v12 = vld [vmem:[%s3190_s1 + $0x244] ss:$16 sps:$4 sm:$0xff]  }
  0x1a   :  { %v2257_v13 = vld [vmem:[%s3190_s1 + $0x24c] ss:$16 sps:$4 sm:$0xff]   ;;  %v2252_v14 = vld [vmem:[%s3190_s1 + $0x240] ss:$16 sps:$4 sm:$0xff]   ;;  %v2255_v15 = vld [vmem:[%s3190_s1 + $0x248] ss:$16 sps:$4 sm:$0xff]  }
  0x1b   :  { %1250 = vmatpush1.bf16.msra.mxu0 %v2184_v26  ;;  %1414 = vmatpush1.bf16.msra.mxu1 %v2185_v27  ;;  %v2260_v16 = vld [vmem:[%s3190_s1 + $0x264] ss:$16 sps:$4 sm:$0xff]   ;;  %v2263_v17 = vld [vmem:[%s3190_s1 + $0x26c] ss:$16 sps:$4 sm:$0xff]   ;;  %v2258_v18 = vld [vmem:[%s3190_s1 + $0x260] ss:$16 sps:$4 sm:$0xff]  }
  0x1c   :  { %1251 = vmatprep.subr.bf16.mxu0 %v2186_v28  ;;  %1415 = vmatprep.subr.bf16.mxu1 %v2188_v29  ;;  %v2261_v19 = vld [vmem:[%s3190_s1 + $0x268] ss:$16 sps:$4 sm:$0xff]   ;;  %v2266_v20 = vld [vmem:[%s3190_s1 + $0x284] ss:$16 sps:$4 sm:$0xff]   ;;  %v2269_v21 = vld [vmem:[%s3190_s1 + $0x28c] ss:$16 sps:$4 sm:$0xff]  }
  0x1d   :  { %v2264_v22 = vld [vmem:[%s3190_s1 + $0x280] ss:$16 sps:$4 sm:$0xff]   ;;  %v2267_v23 = vld [vmem:[%s3190_s1 + $0x288] ss:$16 sps:$4 sm:$0xff]   ;;  %v2272_v24 = vld [vmem:[%s3190_s1 + $0x2a4] ss:$16 sps:$4 sm:$0xff]  }
  0x1e   :  { %v2275_v25 = vld [vmem:[%s3190_s1 + $0x2ac] ss:$16 sps:$4 sm:$0xff]   ;;  %v2270_v26 = vld [vmem:[%s3190_s1 + $0x2a0] ss:$16 sps:$4 sm:$0xff]   ;;  %v2273_v27 = vld [vmem:[%s3190_s1 + $0x2a8] ss:$16 sps:$4 sm:$0xff]  }
  0x1f   :  { %1252 = vmatpush1.bf16.msra.mxu0 %v2190_v30  ;;  %1416 = vmatpush1.bf16.msra.mxu1 %v2191_v31  ;;  %v2278_v28 = vld [vmem:[%s3190_s1 + $0x2c4] ss:$16 sps:$4 sm:$0xff]   ;;  %v2281_v29 = vld [vmem:[%s3190_s1 + $0x2cc] ss:$16 sps:$4 sm:$0xff]   ;;  %v2276_v31 = vld [vmem:[%s3190_s1 + $0x2c0] ss:$16 sps:$4 sm:$0xff]  }
  0x20   :  { %1253 = vmatprep.subr.bf16.mxu0 %v2192_v32  ;;  %1417 = vmatprep.subr.bf16.mxu1 %v2194_v33  ;;  %v24_v30 = vld [vmem:[%s3191_s0 + $0x18] sm:$0xff]  ;;  %v2302_v46 = vld [vmem:[%s3190_s1 + $0x344] ss:$16 sps:$4 sm:$0xff]   ;;  %v2300_v48 = vld [vmem:[%s3190_s1 + $0x340] ss:$16 sps:$4 sm:$0xff]  }
  0x21   :  { %v31_v32 = vpack.c.bf16 %v24_v30, %v24_v30  ;;  %v2279_v33 = vld [vmem:[%s3190_s1 + $0x2c8] ss:$16 sps:$4 sm:$0xff]   ;;  %v2332_v2 = vld [vmem:[%s3190_s1 + $0x3e4] ss:$16 sps:$4 sm:$0xff]  }
  0x22   :  { %v2368_v30 = vld [vmem:[%s3190_s1 + $0x4a4] ss:$16 sps:$4 sm:$0xff]  }
  0x23   :  { %1254 = vmatpush1.bf16.msra.mxu0 %v2196_v34  ;;  %1418 = vmatpush1.bf16.msra.mxu1 %v2197_v35  ;;  %v2284_v34 = vld [vmem:[%s3190_s1 + $0x2e4] ss:$16 sps:$4 sm:$0xff]   ;;  %v2287_v35 = vld [vmem:[%s3190_s1 + $0x2ec] ss:$16 sps:$4 sm:$0xff]  }
  0x24   :  { %1255 = vmatprep.subr.bf16.mxu0 %v2198_v36  ;;  %1419 = vmatprep.subr.bf16.mxu1 %v2200_v37  ;;  %v2282_v36 = vld [vmem:[%s3190_s1 + $0x2e0] ss:$16 sps:$4 sm:$0xff]   ;;  %v2285_v37 = vld [vmem:[%s3190_s1 + $0x2e8] ss:$16 sps:$4 sm:$0xff]  }
  0x27   :  { %1256 = vmatpush1.bf16.msra.mxu0 %v2202_v38  ;;  %1420 = vmatpush1.bf16.msra.mxu1 %v2203_v39  ;;  %v2290_v38 = vld [vmem:[%s3190_s1 + $0x304] ss:$16 sps:$4 sm:$0xff]   ;;  %v2293_v39 = vld [vmem:[%s3190_s1 + $0x30c] ss:$16 sps:$4 sm:$0xff]  }
  0x28   :  { %1257 = vmatprep.subr.bf16.mxu0 %v2204_v40  ;;  %1421 = vmatprep.subr.bf16.mxu1 %v2206_v41  ;;  %v2288_v40 = vld [vmem:[%s3190_s1 + $0x300] ss:$16 sps:$4 sm:$0xff]   ;;  %v2291_v41 = vld [vmem:[%s3190_s1 + $0x308] ss:$16 sps:$4 sm:$0xff]  }
  0x2b   :  { %1258 = vmatpush1.bf16.msra.mxu0 %v2208_v42  ;;  %1422 = vmatpush1.bf16.msra.mxu1 %v2209_v43  ;;  %v2296_v42 = vld [vmem:[%s3190_s1 + $0x324] ss:$16 sps:$4 sm:$0xff]   ;;  %v2299_v43 = vld [vmem:[%s3190_s1 + $0x32c] ss:$16 sps:$4 sm:$0xff]  }
  0x2c   :  { %1259 = vmatprep.subr.bf16.mxu0 %v2210_v44  ;;  %1423 = vmatprep.subr.bf16.mxu1 %v2212_v45  ;;  %v2294_v44 = vld [vmem:[%s3190_s1 + $0x320] ss:$16 sps:$4 sm:$0xff]   ;;  %v2297_v45 = vld [vmem:[%s3190_s1 + $0x328] ss:$16 sps:$4 sm:$0xff]  }
  0x2f   :  { %1260 = vmatpush1.bf16.msra.mxu0 %v2214_v47  ;;  %1424 = vmatpush1.bf16.msra.mxu1 %v2215_v49  ;;  %v2305_v47 = vld [vmem:[%s3190_s1 + $0x34c] ss:$16 sps:$4 sm:$0xff]   ;;  %v2303_v49 = vld [vmem:[%s3190_s1 + $0x348] ss:$16 sps:$4 sm:$0xff]  }
  0x30   :  { %1261 = vmatprep.subr.bf16.mxu0 %v2216_v50  ;;  %1425 = vmatprep.subr.bf16.mxu1 %v2218_v51  ;;  %v2308_v50 = vld [vmem:[%s3190_s1 + $0x364] ss:$16 sps:$4 sm:$0xff]   ;;  %v2311_v51 = vld [vmem:[%s3190_s1 + $0x36c] ss:$16 sps:$4 sm:$0xff]  }
  0x33   :  { %1262 = vmatpush1.bf16.msra.mxu0 %v2220_v52  ;;  %1426 = vmatpush1.bf16.msra.mxu1 %v2221_v53  ;;  %v2306_v52 = vld [vmem:[%s3190_s1 + $0x360] ss:$16 sps:$4 sm:$0xff]   ;;  %v2309_v53 = vld [vmem:[%s3190_s1 + $0x368] ss:$16 sps:$4 sm:$0xff]  }
  0x34   :  { %1263 = vmatprep.subr.bf16.mxu0 %v2222_v54  ;;  %1427 = vmatprep.subr.bf16.mxu1 %v2224_v55  ;;  %v2314_v54 = vld [vmem:[%s3190_s1 + $0x384] ss:$16 sps:$4 sm:$0xff]   ;;  %v2317_v55 = vld [vmem:[%s3190_s1 + $0x38c] ss:$16 sps:$4 sm:$0xff]  }
  0x37   :  { %1264 = vmatpush1.bf16.msra.mxu0 %v2226_v56  ;;  %1428 = vmatpush1.bf16.msra.mxu1 %v2227_v57  ;;  %v2312_v56 = vld [vmem:[%s3190_s1 + $0x380] ss:$16 sps:$4 sm:$0xff]   ;;  %v2315_v57 = vld [vmem:[%s3190_s1 + $0x388] ss:$16 sps:$4 sm:$0xff]  }
  0x38   :  { %1265 = vmatprep.subr.bf16.mxu0 %v2228_v58  ;;  %1429 = vmatprep.subr.bf16.mxu1 %v2230_v59  ;;  %v2320_v58 = vld [vmem:[%s3190_s1 + $0x3a4] ss:$16 sps:$4 sm:$0xff]   ;;  %v2323_v59 = vld [vmem:[%s3190_s1 + $0x3ac] ss:$16 sps:$4 sm:$0xff]  }
  0x3b   :  { %1266 = vmatpush1.bf16.msra.mxu0 %v2232_v60  ;;  %1430 = vmatpush1.bf16.msra.mxu1 %v2233_v61  ;;  %v2318_v60 = vld [vmem:[%s3190_s1 + $0x3a0] ss:$16 sps:$4 sm:$0xff]   ;;  %v2321_v61 = vld [vmem:[%s3190_s1 + $0x3a8] ss:$16 sps:$4 sm:$0xff]  }
  0x3c   :  { %1267 = vmatprep.subr.bf16.mxu0 %v2234_v62  ;;  %1431 = vmatprep.subr.bf16.mxu1 %v2236_v63  ;;  %v2326_v62 = vld [vmem:[%s3190_s1 + $0x3c4] ss:$16 sps:$4 sm:$0xff]   ;;  %v2329_v63 = vld [vmem:[%s3190_s1 + $0x3cc] ss:$16 sps:$4 sm:$0xff]  }
  0x3f   :  { %1268 = vmatpush1.bf16.msra.mxu0 %v2238_v0  ;;  %1432 = vmatpush1.bf16.msra.mxu1 %v2239_v1  ;;  %v2324_v0 = vld [vmem:[%s3190_s1 + $0x3c0] ss:$16 sps:$4 sm:$0xff]   ;;  %v2327_v1 = vld [vmem:[%s3190_s1 + $0x3c8] ss:$16 sps:$4 sm:$0xff]  }
  0x40   :  { %1278 = vmatprep.subr.bf16.mxu0 %v2242_v3  ;;  %1442 = vmatprep.subr.bf16.mxu1 %v2245_v4  ;;  %v2335_v3 = vld [vmem:[%s3190_s1 + $0x3ec] ss:$16 sps:$4 sm:$0xff]   ;;  %v2330_v4 = vld [vmem:[%s3190_s1 + $0x3e0] ss:$16 sps:$4 sm:$0xff]  }
  0x42   :  { %1270 = vmatmul.mubr.bf16.vlgmr.msra.gmra.mrb[0].mxu0 %v28_v5  ;;  %1434 = vmatmul.mubr.bf16.vlgmr.msra.gmra.mrb[0].mxu1 %v28_v5  ;;  %v2333_v5 = vld [vmem:[%s3190_s1 + $0x3e8] ss:$16 sps:$4 sm:$0xff]  }
  0x43   :  { %1279 = vmatpush1.bf16.msra.mxu0 %v2240_v6  ;;  %1443 = vmatpush1.bf16.msra.mxu1 %v2243_v7  ;;  %v2338_v6 = vld [vmem:[%s3190_s1 + $0x404] ss:$16 sps:$4 sm:$0xff]  }
  0x44   :  { %1280 = vmatprep.subr.bf16.mxu0 %v2248_v8  ;;  %1444 = vmatprep.subr.bf16.mxu1 %v2251_v9  ;;  %v23_v7 = vld [vmem:[%s3191_s0 + $0x10] sm:$0xff]  ;;  %v2341_v8 = vld [vmem:[%s3190_s1 + $0x40c] ss:$16 sps:$4 sm:$0xff]  }
  0x45   :  { %1310 = vmatprep.mubr.bf16.mxu0 %v31_v32  ;;  %1474 = vmatprep.mubr.bf16.mxu1 %v31_v32  ;;  %v2336_v9 = vld [vmem:[%s3190_s1 + $0x400] ss:$16 sps:$4 sm:$0xff]  }
  0x46   :  { %v2366_v32 = vld [vmem:[%s3190_s1 + $0x4a0] ss:$16 sps:$4 sm:$0xff]  }
  0x47   :  { %1281 = vmatpush1.bf16.msra.mxu0 %v2246_v10  ;;  %1445 = vmatpush1.bf16.msra.mxu1 %v2249_v11  ;;  %v30_v10 = vpack.c.bf16 %v23_v7, %v23_v7  ;;  %v2339_v11 = vld [vmem:[%s3190_s1 + $0x408] ss:$16 sps:$4 sm:$0xff]   ;;  %v2431_v7 = vld [vmem:[%s3190_s1 + $0x5ec] ss:$16 sps:$4 sm:$0xff]  }
  0x48   :  { %1282 = vmatprep.subr.bf16.mxu0 %v2254_v12  ;;  %1446 = vmatprep.subr.bf16.mxu1 %v2257_v13  ;;  %v2344_v12 = vld [vmem:[%s3190_s1 + $0x424] ss:$16 sps:$4 sm:$0xff]   ;;  %v2347_v13 = vld [vmem:[%s3190_s1 + $0x42c] ss:$16 sps:$4 sm:$0xff]  }
  0x4b   :  { %1283 = vmatpush1.bf16.msra.mxu0 %v2252_v14  ;;  %1447 = vmatpush1.bf16.msra.mxu1 %v2255_v15  ;;  %v26_v14 = vld [vmem:[%s3191_s0 + $0x28] sm:$0xff] }
  0x4c   :  { %1284 = vmatprep.subr.bf16.mxu0 %v2260_v16  ;;  %1448 = vmatprep.subr.bf16.mxu1 %v2263_v17  ;;  %v33_v15 = vpack.c.bf16 %v26_v14, %v26_v14  ;;  %v2342_v16 = vld [vmem:[%s3190_s1 + $0x420] ss:$16 sps:$4 sm:$0xff]   ;;  %v2345_v17 = vld [vmem:[%s3190_s1 + $0x428] ss:$16 sps:$4 sm:$0xff]  }
  0x4d   :  { %v2432_v14 = vld [vmem:[%s3190_s1 + $0x600] ss:$16 sps:$4 sm:$0xff]  }
  0x4f   :  { %1285 = vmatpush1.bf16.msra.mxu0 %v2258_v18  ;;  %1449 = vmatpush1.bf16.msra.mxu1 %v2261_v19  ;;  %v2350_v18 = vld [vmem:[%s3190_s1 + $0x444] ss:$16 sps:$4 sm:$0xff]   ;;  %v2353_v19 = vld [vmem:[%s3190_s1 + $0x44c] ss:$16 sps:$4 sm:$0xff]  }
  0x50   :  { %1286 = vmatprep.subr.bf16.mxu0 %v2266_v20  ;;  %1450 = vmatprep.subr.bf16.mxu1 %v2269_v21  ;;  %v2348_v20 = vld [vmem:[%s3190_s1 + $0x440] ss:$16 sps:$4 sm:$0xff]   ;;  %v2351_v21 = vld [vmem:[%s3190_s1 + $0x448] ss:$16 sps:$4 sm:$0xff]  }
  0x53   :  { %1287 = vmatpush1.bf16.msra.mxu0 %v2264_v22  ;;  %1451 = vmatpush1.bf16.msra.mxu1 %v2267_v23  ;;  %v2356_v22 = vld [vmem:[%s3190_s1 + $0x464] ss:$16 sps:$4 sm:$0xff]   ;;  %v2359_v23 = vld [vmem:[%s3190_s1 + $0x46c] ss:$16 sps:$4 sm:$0xff]  }
  0x54   :  { %1288 = vmatprep.subr.bf16.mxu0 %v2272_v24  ;;  %1452 = vmatprep.subr.bf16.mxu1 %v2275_v25  ;;  %v2354_v24 = vld [vmem:[%s3190_s1 + $0x460] ss:$16 sps:$4 sm:$0xff]   ;;  %v2357_v25 = vld [vmem:[%s3190_s1 + $0x468] ss:$16 sps:$4 sm:$0xff]  }
  0x57   :  { %1289 = vmatpush1.bf16.msra.mxu0 %v2270_v26  ;;  %1453 = vmatpush1.bf16.msra.mxu1 %v2273_v27  ;;  %v2362_v26 = vld [vmem:[%s3190_s1 + $0x484] ss:$16 sps:$4 sm:$0xff]   ;;  %v2365_v27 = vld [vmem:[%s3190_s1 + $0x48c] ss:$16 sps:$4 sm:$0xff]  }
  0x58   :  { %1290 = vmatprep.subr.bf16.mxu0 %v2278_v28  ;;  %1454 = vmatprep.subr.bf16.mxu1 %v2281_v29  ;;  %v2360_v28 = vld [vmem:[%s3190_s1 + $0x480] ss:$16 sps:$4 sm:$0xff]   ;;  %v2363_v29 = vld [vmem:[%s3190_s1 + $0x488] ss:$16 sps:$4 sm:$0xff]  }
  0x5b   :  { %1291 = vmatpush1.bf16.msra.mxu0 %v2276_v31  ;;  %1455 = vmatpush1.bf16.msra.mxu1 %v2279_v33  ;;  %v2371_v31 = vld [vmem:[%s3190_s1 + $0x4ac] ss:$16 sps:$4 sm:$0xff]   ;;  %v2369_v33 = vld [vmem:[%s3190_s1 + $0x4a8] ss:$16 sps:$4 sm:$0xff]  }
  0x5c   :  { %1292 = vmatprep.subr.bf16.mxu0 %v2284_v34  ;;  %1456 = vmatprep.subr.bf16.mxu1 %v2287_v35  ;;  %v2374_v34 = vld [vmem:[%s3190_s1 + $0x4c4] ss:$16 sps:$4 sm:$0xff]   ;;  %v2377_v35 = vld [vmem:[%s3190_s1 + $0x4cc] ss:$16 sps:$4 sm:$0xff]  }
  0x5f   :  { %1293 = vmatpush1.bf16.msra.mxu0 %v2282_v36  ;;  %1457 = vmatpush1.bf16.msra.mxu1 %v2285_v37  ;;  %v2372_v36 = vld [vmem:[%s3190_s1 + $0x4c0] ss:$16 sps:$4 sm:$0xff]   ;;  %v2375_v37 = vld [vmem:[%s3190_s1 + $0x4c8] ss:$16 sps:$4 sm:$0xff]  }
  0x60   :  { %1294 = vmatprep.subr.bf16.mxu0 %v2290_v38  ;;  %1458 = vmatprep.subr.bf16.mxu1 %v2293_v39  ;;  %v2380_v38 = vld [vmem:[%s3190_s1 + $0x4e4] ss:$16 sps:$4 sm:$0xff]   ;;  %v2383_v39 = vld [vmem:[%s3190_s1 + $0x4ec] ss:$16 sps:$4 sm:$0xff]  }
  0x63   :  { %1295 = vmatpush1.bf16.msra.mxu0 %v2288_v40  ;;  %1459 = vmatpush1.bf16.msra.mxu1 %v2291_v41  ;;  %v2378_v40 = vld [vmem:[%s3190_s1 + $0x4e0] ss:$16 sps:$4 sm:$0xff]   ;;  %v2381_v41 = vld [vmem:[%s3190_s1 + $0x4e8] ss:$16 sps:$4 sm:$0xff]  }
  0x64   :  { %1296 = vmatprep.subr.bf16.mxu0 %v2296_v42  ;;  %1460 = vmatprep.subr.bf16.mxu1 %v2299_v43  ;;  %v2386_v42 = vld [vmem:[%s3190_s1 + $0x504] ss:$16 sps:$4 sm:$0xff]   ;;  %v2389_v43 = vld [vmem:[%s3190_s1 + $0x50c] ss:$16 sps:$4 sm:$0xff]  }
  0x67   :  { %1297 = vmatpush1.bf16.msra.mxu0 %v2294_v44  ;;  %1461 = vmatpush1.bf16.msra.mxu1 %v2297_v45  ;;  %v2384_v44 = vld [vmem:[%s3190_s1 + $0x500] ss:$16 sps:$4 sm:$0xff]   ;;  %v2387_v45 = vld [vmem:[%s3190_s1 + $0x508] ss:$16 sps:$4 sm:$0xff]  }
  0x68   :  { %1298 = vmatprep.subr.bf16.mxu0 %v2302_v46  ;;  %1462 = vmatprep.subr.bf16.mxu1 %v2305_v47  ;;  %v2392_v46 = vld [vmem:[%s3190_s1 + $0x524] ss:$16 sps:$4 sm:$0xff]   ;;  %v2395_v47 = vld [vmem:[%s3190_s1 + $0x52c] ss:$16 sps:$4 sm:$0xff]  }
  0x6b   :  { %1299 = vmatpush1.bf16.msra.mxu0 %v2300_v48  ;;  %1463 = vmatpush1.bf16.msra.mxu1 %v2303_v49  ;;  %v2390_v48 = vld [vmem:[%s3190_s1 + $0x520] ss:$16 sps:$4 sm:$0xff]   ;;  %v2393_v49 = vld [vmem:[%s3190_s1 + $0x528] ss:$16 sps:$4 sm:$0xff]  }
  0x6c   :  { %1300 = vmatprep.subr.bf16.mxu0 %v2308_v50  ;;  %1464 = vmatprep.subr.bf16.mxu1 %v2311_v51  ;;  %v2398_v50 = vld [vmem:[%s3190_s1 + $0x544] ss:$16 sps:$4 sm:$0xff]   ;;  %v2401_v51 = vld [vmem:[%s3190_s1 + $0x54c] ss:$16 sps:$4 sm:$0xff]  }
  0x6f   :  { %1301 = vmatpush1.bf16.msra.mxu0 %v2306_v52  ;;  %1465 = vmatpush1.bf16.msra.mxu1 %v2309_v53  ;;  %v2396_v52 = vld [vmem:[%s3190_s1 + $0x540] ss:$16 sps:$4 sm:$0xff]   ;;  %v2399_v53 = vld [vmem:[%s3190_s1 + $0x548] ss:$16 sps:$4 sm:$0xff]  }
  0x70   :  { %1302 = vmatprep.subr.bf16.mxu0 %v2314_v54  ;;  %1466 = vmatprep.subr.bf16.mxu1 %v2317_v55  ;;  %v2404_v54 = vld [vmem:[%s3190_s1 + $0x564] ss:$16 sps:$4 sm:$0xff]   ;;  %v2407_v55 = vld [vmem:[%s3190_s1 + $0x56c] ss:$16 sps:$4 sm:$0xff]  }
  0x73   :  { %1303 = vmatpush1.bf16.msra.mxu0 %v2312_v56  ;;  %1467 = vmatpush1.bf16.msra.mxu1 %v2315_v57  ;;  %v2402_v56 = vld [vmem:[%s3190_s1 + $0x560] ss:$16 sps:$4 sm:$0xff]   ;;  %v2405_v57 = vld [vmem:[%s3190_s1 + $0x568] ss:$16 sps:$4 sm:$0xff]  }
  0x74   :  { %1304 = vmatprep.subr.bf16.mxu0 %v2320_v58  ;;  %1468 = vmatprep.subr.bf16.mxu1 %v2323_v59  ;;  %v2410_v58 = vld [vmem:[%s3190_s1 + $0x584] ss:$16 sps:$4 sm:$0xff]   ;;  %v2413_v59 = vld [vmem:[%s3190_s1 + $0x58c] ss:$16 sps:$4 sm:$0xff]  }
  0x77   :  { %1305 = vmatpush1.bf16.msra.mxu0 %v2318_v60  ;;  %1469 = vmatpush1.bf16.msra.mxu1 %v2321_v61  ;;  %v2408_v60 = vld [vmem:[%s3190_s1 + $0x580] ss:$16 sps:$4 sm:$0xff]   ;;  %v2411_v61 = vld [vmem:[%s3190_s1 + $0x588] ss:$16 sps:$4 sm:$0xff]  }
  0x78   :  { %1306 = vmatprep.subr.bf16.mxu0 %v2326_v62  ;;  %1470 = vmatprep.subr.bf16.mxu1 %v2329_v63  ;;  %v2416_v62 = vld [vmem:[%s3190_s1 + $0x5a4] ss:$16 sps:$4 sm:$0xff]   ;;  %v2419_v63 = vld [vmem:[%s3190_s1 + $0x5ac] ss:$16 sps:$4 sm:$0xff]  }
  0x7b   :  { %1307 = vmatpush1.bf16.msra.mxu0 %v2324_v0  ;;  %1471 = vmatpush1.bf16.msra.mxu1 %v2327_v1  ;;  %v2414_v0 = vld [vmem:[%s3190_s1 + $0x5a0] ss:$16 sps:$4 sm:$0xff]   ;;  %v2417_v1 = vld [vmem:[%s3190_s1 + $0x5a8] ss:$16 sps:$4 sm:$0xff]  }
  0x7c   :  { %1308 = vmatprep.subr.bf16.mxu0 %v2332_v2  ;;  %1472 = vmatprep.subr.bf16.mxu1 %v2335_v3  ;;  %v2422_v2 = vld [vmem:[%s3190_s1 + $0x5c4] ss:$16 sps:$4 sm:$0xff]   ;;  %v2425_v3 = vld [vmem:[%s3190_s1 + $0x5cc] ss:$16 sps:$4 sm:$0xff]  }
  0x7f   :  { %1309 = vmatpush1.bf16.msra.mxu0 %v2330_v4  ;;  %1473 = vmatpush1.bf16.msra.mxu1 %v2333_v5  ;;  %v2420_v4 = vld [vmem:[%s3190_s1 + $0x5c0] ss:$16 sps:$4 sm:$0xff]   ;;  %v2423_v5 = vld [vmem:[%s3190_s1 + $0x5c8] ss:$16 sps:$4 sm:$0xff]  }
  0x80   :  { %1319 = vmatprep.subr.bf16.mxu0 %v2338_v6  ;;  %1483 = vmatprep.subr.bf16.mxu1 %v2341_v8  ;;  %v2428_v6 = vld [vmem:[%s3190_s1 + $0x5e4] ss:$16 sps:$4 sm:$0xff]   ;;  %v2426_v8 = vld [vmem:[%s3190_s1 + $0x5e0] ss:$16 sps:$4 sm:$0xff]  }
  0x82   :  { %1311 = vmatmul.mubr.bf16.vlgmr.msra.gmra.mrb[0].mxu0 %v30_v10  ;;  %1475 = vmatmul.mubr.bf16.vlgmr.msra.gmra.mrb[0].mxu1 %v30_v10  ;;  %v25_v10 = vld [vmem:[%s3191_s0 + $0x20] sm:$0xff] }
  0x83   :  { %1320 = vmatpush1.bf16.msra.mxu0 %v2336_v9  ;;  %1484 = vmatpush1.bf16.msra.mxu1 %v2339_v11  ;;  %v2429_v9 = vld [vmem:[%s3190_s1 + $0x5e8] ss:$16 sps:$4 sm:$0xff]   ;;  %v2434_v11 = vld [vmem:[%s3190_s1 + $0x604] ss:$16 sps:$4 sm:$0xff]  }
  0x84   :  { %1321 = vmatprep.subr.bf16.mxu0 %v2344_v12  ;;  %1485 = vmatprep.subr.bf16.mxu1 %v2347_v13  ;;  %v2437_v12 = vld [vmem:[%s3190_s1 + $0x60c] ss:$16 sps:$4 sm:$0xff]   ;;  %v32_v13 = vpack.c.bf16 %v25_v10, %v25_v10 }
  0x85   :  { %1351 = vmatprep.mubr.bf16.mxu0 %v33_v15  ;;  %1515 = vmatprep.mubr.bf16.mxu1 %v33_v15  ;;  %v2435_v15 = vld [vmem:[%s3190_s1 + $0x608] ss:$16 sps:$4 sm:$0xff]  }
  0x87   :  { %1322 = vmatpush1.bf16.msra.mxu0 %v2342_v16  ;;  %1486 = vmatpush1.bf16.msra.mxu1 %v2345_v17  ;;  %v2439_v16 = vld [vmem:[%s3192_s3 + $0x40] sm:$0xff]   ;;  %v2463_v17 = vmov 0  }
  0x88   :  { %1323 = vmatprep.subr.bf16.mxu0 %v2350_v18  ;;  %1487 = vmatprep.subr.bf16.mxu1 %v2353_v19  ;;  %v27_v18 = vld [vmem:[%s3191_s0 + $0x30] sm:$0xff] }
  0x89   :  { %v34_v19 = vpack.c.bf16 %v27_v18, %v27_v18 }
  0x8b   :  { %1324 = vmatpush1.bf16.msra.mxu0 %v2348_v20  ;;  %1488 = vmatpush1.bf16.msra.mxu1 %v2351_v21  ;;  %v2438_v20 = vld [vmem:[%s3192_s3 + $0x80] sm:$0xff]  }
  0x8c   :  { %1325 = vmatprep.subr.bf16.mxu0 %v2356_v22  ;;  %1489 = vmatprep.subr.bf16.mxu1 %v2359_v23  ;;  %v2440_v21 = vld [vmem:[%s3192_s3] sm:$0xff]   ;;  %v2442_v22 = vld [vmem:[%s3192_s3 + $0x48] sm:$0xff]  }
  0x8d   :  { %v2441_v23 = vld [vmem:[%s3192_s3 + $0x88] sm:$0xff]  }
  0x8f   :  { %1326 = vmatpush1.bf16.msra.mxu0 %v2354_v24  ;;  %1490 = vmatpush1.bf16.msra.mxu1 %v2357_v25  ;;  %v2443_v24 = vld [vmem:[%s3192_s3 + $0x8] sm:$0xff]   ;;  %v2445_v25 = vld [vmem:[%s3192_s3 + $0x50] sm:$0xff]  }
  0x90   :  { %1327 = vmatprep.subr.bf16.mxu0 %v2362_v26  ;;  %1491 = vmatprep.subr.bf16.mxu1 %v2365_v27  ;;  %v2444_v26 = vld [vmem:[%s3192_s3 + $0x90] sm:$0xff]  }
  0x91   :  { %v2446_v27 = vld [vmem:[%s3192_s3 + $0x10] sm:$0xff]  }
  0x93   :  { %1328 = vmatpush1.bf16.msra.mxu0 %v2360_v28  ;;  %1492 = vmatpush1.bf16.msra.mxu1 %v2363_v29  ;;  %v2448_v28 = vld [vmem:[%s3192_s3 + $0x58] sm:$0xff]  }
  0x94   :  { %1329 = vmatprep.subr.bf16.mxu0 %v2368_v30  ;;  %1493 = vmatprep.subr.bf16.mxu1 %v2371_v31  ;;  %v2447_v29 = vld [vmem:[%s3192_s3 + $0x98] sm:$0xff]   ;;  %v2451_v31 = vld [vmem:[%s3192_s3 + $0x60] sm:$0xff]  }
  0x95   :  { %v2449_v30 = vld [vmem:[%s3192_s3 + $0x18] sm:$0xff]  }
  0x97   :  { %1330 = vmatpush1.bf16.msra.mxu0 %v2366_v32  ;;  %1494 = vmatpush1.bf16.msra.mxu1 %v2369_v33  ;;  %v2450_v32 = vld [vmem:[%s3192_s3 + $0xa0] sm:$0xff]  }
  0x98   :  { %1331 = vmatprep.subr.bf16.mxu0 %v2374_v34  ;;  %1495 = vmatprep.subr.bf16.mxu1 %v2377_v35  ;;  %v2452_v33 = vld [vmem:[%s3192_s3 + $0x20] sm:$0xff]   ;;  %v2454_v34 = vld [vmem:[%s3192_s3 + $0x68] sm:$0xff]  }
  0x99   :  { %v2453_v35 = vld [vmem:[%s3192_s3 + $0xa8] sm:$0xff]  }
  0x9b   :  { %1332 = vmatpush1.bf16.msra.mxu0 %v2372_v36  ;;  %1496 = vmatpush1.bf16.msra.mxu1 %v2375_v37  ;;  %v2455_v36 = vld [vmem:[%s3192_s3 + $0x28] sm:$0xff]   ;;  %v2456_v37 = vld [vmem:[%s3192_s3 + $0xb0] sm:$0xff]  }
  0x9c   :  { %1333 = vmatprep.subr.bf16.mxu0 %v2380_v38  ;;  %1497 = vmatprep.subr.bf16.mxu1 %v2383_v39  ;;  %v2457_v38 = vld [vmem:[%s3192_s3 + $0x70] sm:$0xff]  }
  0x9d   :  { %v2458_v39 = vld [vmem:[%s3192_s3 + $0x30] sm:$0xff]  }
  0x9f   :  { %1334 = vmatpush1.bf16.msra.mxu0 %v2378_v40  ;;  %1498 = vmatpush1.bf16.msra.mxu1 %v2381_v41  ;;  %v2459_v40 = vld [vmem:[%s3192_s3 + $0xb8] sm:$0xff]  }
  0xa0   :  { %1335 = vmatprep.subr.bf16.mxu0 %v2386_v42  ;;  %1499 = vmatprep.subr.bf16.mxu1 %v2389_v43  ;;  %v2460_v41 = vld [vmem:[%s3192_s3 + $0x78] sm:$0xff]   ;;  %v2462_v43 = vld [vmem:[%s3192_s3 + $0xc0] sm:$0xff]  }
  0xa1   :  { %v2461_v42 = vld [vmem:[%s3192_s3 + $0x38] sm:$0xff]  }
  0xa3   :  { %1336 = vmatpush1.bf16.msra.mxu0 %v2384_v44  ;;  %1500 = vmatpush1.bf16.msra.mxu1 %v2387_v45  ;;  %v233_v44 = vlaneseq }
  0xa4   :  { %1337 = vmatprep.subr.bf16.mxu0 %v2392_v46  ;;  %1501 = vmatprep.subr.bf16.mxu1 %v2395_v47 }
  0xa5   :  { %v234_v45 = vshrl.u32 %v233_v44, 7 }
  0xa7   :  { %1338 = vmatpush1.bf16.msra.mxu0 %v2390_v48  ;;  %1502 = vmatpush1.bf16.msra.mxu1 %v2393_v49  ;;  %v235_v46 = vsub.s32 0, %v234_v45  ;;  %v243_v47 = vsub.s32 2, %v234_v45  ;;  %v231_v48 = vld [vmem:[%s3193_s2] sm:$0xf]  ;;  %v239_v49 = vsub.s32 1, %v234_v45 }
  0xa8   :  { %1339 = vmatprep.subr.bf16.mxu0 %v2398_v50  ;;  %1503 = vmatprep.subr.bf16.mxu1 %v2401_v51  ;;  %v247_v50 = vsub.s32 3, %v234_v45 }
  0xa9   :  { %v236_v51 = vrot.slane %v231_v48, %v235_v46 }
  0xab   :  { %1340 = vmatpush1.bf16.msra.mxu0 %v2396_v52  ;;  %1504 = vmatpush1.bf16.msra.mxu1 %v2399_v53  ;;  %v244_v52 = vrot.slane %v231_v48, %v243_v47  ;;  %v240_v53 = vrot.slane %v231_v48, %v239_v49 }
  0xac   :  { %1341 = vmatprep.subr.bf16.mxu0 %v2404_v54  ;;  %1505 = vmatprep.subr.bf16.mxu1 %v2407_v55  ;;  %v248_v54 = vrot.slane %v231_v48, %v247_v50 }
  0xaf   :  { %1342 = vmatpush1.bf16.msra.mxu0 %v2402_v56  ;;  %1506 = vmatpush1.bf16.msra.mxu1 %v2405_v57 }
  0xb0   :  { %1343 = vmatprep.subr.bf16.mxu0 %v2410_v58  ;;  %1507 = vmatprep.subr.bf16.mxu1 %v2413_v59 }
  0xb3   :  { %1344 = vmatpush1.bf16.msra.mxu0 %v2408_v60  ;;  %1508 = vmatpush1.bf16.msra.mxu1 %v2411_v61 }
  0xb4   :  { %1345 = vmatprep.subr.bf16.mxu0 %v2416_v62  ;;  %1509 = vmatprep.subr.bf16.mxu1 %v2419_v63 }
  0xb7   :  { %1346 = vmatpush1.bf16.msra.mxu0 %v2414_v0  ;;  %1510 = vmatpush1.bf16.msra.mxu1 %v2417_v1 }
  0xb8   :  { %1347 = vmatprep.subr.bf16.mxu0 %v2422_v2  ;;  %1511 = vmatprep.subr.bf16.mxu1 %v2425_v3 }
  0xbb   :  { %1348 = vmatpush1.bf16.msra.mxu0 %v2420_v4  ;;  %1512 = vmatpush1.bf16.msra.mxu1 %v2423_v5 }
  0xbc   :  { %1349 = vmatprep.subr.bf16.mxu0 %v2428_v6  ;;  %1513 = vmatprep.subr.bf16.mxu1 %v2431_v7 }
  0xbf   :  { %1350 = vmatpush1.bf16.msra.mxu0 %v2426_v8  ;;  %1514 = vmatpush1.bf16.msra.mxu1 %v2429_v9 }
  0xc0   :  { %1360 = vmatprep.subr.bf16.mxu0 %v2434_v11  ;;  %1524 = vmatprep.subr.bf16.mxu1 %v2437_v12 }
  0xc2   :  { %1352 = vmatmul.mubr.bf16.vlgmr.msra.gmra.mrb[0].mxu0 %v32_v13  ;;  %1516 = vmatmul.mubr.bf16.vlgmr.msra.gmra.mrb[0].mxu1 %v32_v13  ;;  %v2066_v13 = vld [vmem:[%s3194_s4] ss:$0 sm:$0xff] }
  0xc3   :  { %1361 = vmatpush1.bf16.msra.mxu0 %v2432_v14  ;;  %1525 = vmatpush1.bf16.msra.mxu1 %v2435_v15 }
  0xc4   :  { %1392 = vmatprep.mubr.bf16.mxu0 %v2463_v17  ;;  %1556 = vmatprep.mubr.bf16.mxu1 %v2463_v17 }
  0xc5   :  { %1823 = vmatprep.subr.bf16.mxu1 %v2463_v17  ;;  %2093 = vmatprep.subr.bf16.mxu0 %v2439_v16 }
  0xce   :  { %2064 = vmatmul.mubr.msk.bf16.vlgmr.msra.gmra.mrb[0].mxu0 %vm1233_vm0, %v34_v19  ;;  %2065 = vmatmul.mubr.msk.bf16.vlgmr.msra.gmra.mrb[0].mxu1 %vm1233_vm0, %v34_v19 }
  0xcf   :  { %1824 = vmatpush1.bf16.msra.mxu1 %v2438_v20  ;;  %2094 = vmatpush3.bf16.msra.mxu0 %v2440_v21 }
  0xd0   :  { %1825 = vmatprep.subr.bf16.mxu1 %v2463_v17  ;;  %2095 = vmatprep.subr.bf16.mxu0 %v2442_v22 }
  0xd3   :  { %1826 = vmatpush1.bf16.msra.mxu1 %v2441_v23  ;;  %2096 = vmatpush3.bf16.msra.mxu0 %v2443_v24 }
  0xd4   :  { %1827 = vmatprep.subr.bf16.mxu1 %v2463_v17  ;;  %2097 = vmatprep.subr.bf16.mxu0 %v2445_v25 }
  0xd7   :  { %1828 = vmatpush1.bf16.msra.mxu1 %v2444_v26  ;;  %2098 = vmatpush3.bf16.msra.mxu0 %v2446_v27 }
  0xd8   :  { %1829 = vmatprep.subr.bf16.mxu1 %v2463_v17  ;;  %2099 = vmatprep.subr.bf16.mxu0 %v2448_v28 }
  0xdb   :  { %1830 = vmatpush1.bf16.msra.mxu1 %v2447_v29  ;;  %2100 = vmatpush3.bf16.msra.mxu0 %v2449_v30 }
  0xdc   :  { %1831 = vmatprep.subr.bf16.mxu1 %v2463_v17  ;;  %2101 = vmatprep.subr.bf16.mxu0 %v2451_v31 }
  0xdf   :  { %1832 = vmatpush1.bf16.msra.mxu1 %v2450_v32  ;;  %2102 = vmatpush3.bf16.msra.mxu0 %v2452_v33 }
  0xe0   :  { %1833 = vmatprep.subr.bf16.mxu1 %v2463_v17  ;;  %2103 = vmatprep.subr.bf16.mxu0 %v2454_v34 }
  0xe3   :  { %1834 = vmatpush1.bf16.msra.mxu1 %v2453_v35  ;;  %2104 = vmatpush3.bf16.msra.mxu0 %v2455_v36 }
  0xe4   :  { %1835 = vmatprep.subr.bf16.mxu1 %v2463_v17  ;;  %2105 = vmatprep.subr.bf16.mxu0 %v2457_v38 }
  0xe7   :  { %1836 = vmatpush1.bf16.msra.mxu1 %v2456_v37  ;;  %2106 = vmatpush3.bf16.msra.mxu0 %v2458_v39 }
  0xe8   :  { %1837 = vmatprep.subr.bf16.mxu1 %v2463_v17  ;;  %2107 = vmatprep.subr.bf16.mxu0 %v2460_v41 }
  0xeb   :  { %1838 = vmatpush1.bf16.msra.mxu1 %v2459_v40  ;;  %2108 = vmatpush3.bf16.msra.mxu0 %v2461_v42 }
  0xec   :  { %1839 = vmatprep.subr.bf16.mxu1 %v2463_v17 }
  0xef   :  { %1840 = vmatpush1.bf16.msra.mxu1 %v2462_v43 }
 0x1a1   :  { %v1394_v55 = vpop.f32.mrb[0].mxu0  ;;  %v1558_v56 = vpop.f32.mrb[0].mxu1 }
 0x1a2   :  { %v2115_v57 = vadd.f32 %v1394_v55, %v236_v51  ;;  %v2117_v58 = vadd.f32 %v1558_v56, %v244_v52  ;;  %v1396_v59 = vpop.f32.mrb[1].mxu0  ;;  %v1560_v60 = vpop.f32.mrb[1].mxu1 }
 0x1a3   :  { %v2116_v61 = vadd.f32 %v1396_v59, %v240_v53  ;;  %v2118_v62 = vadd.f32 %v1560_v60, %v248_v54  ;;  %v1398_v63 = vpop.f32.mrb[2].mxu0  ;;  %v1562_v0 = vpop.f32.mrb[2].mxu1 }
 0x1a4   :  { %v1565_v1 = vmax.f32 %v2115_v57, 0.0  ;;  %v1567_v2 = vmax.f32 %v2117_v58, 0.0  ;;  %v1399_v3 = vpop.f32.mrb[3].mxu0  ;;  %v1563_v4 = vpop.f32.mrb[3].mxu1 }
 0x1a5   :  { %v1566_v5 = vmax.f32 %v2116_v61, 0.0  ;;  %v1568_v6 = vmax.f32 %v2118_v62, 0.0 }
 0x1a6   :  { %v1569_v9 = vpack.c.bf16 %v1565_v1, %v1565_v1  ;;  %v1571_v10 = vpack.c.bf16 %v1567_v2, %v1567_v2 }
 0x1a7   :  { %v1570_v7 = vpack.c.bf16 %v1566_v5, %v1566_v5  ;;  %v1572_v8 = vpack.c.bf16 %v1568_v6, %v1568_v6 }
 0x1a9   :  { %1815 = vmatprep.mubr.bf16.mxu0 %v1570_v7  ;;  %2092 = vmatprep.mubr.msk.bf16.mxu1 %vm1233_vm0, %v1572_v8 }
 0x1aa   :  { %1816 = vmatmul.mubr.bf16.vlgmr.msra.gmra.mrb[4].mxu0 %v1569_v9  ;;  %1856 = vmatmul.mubr.bf16.vlgmr.msra.gmra.mrb[4].mxu1 %v1571_v10 }
 0x27d   :  { %v2109_v11 = vpop.f32.mrb[4].mxu0  ;;  %v1857_v12 = vpop.f32.mrb[4].mxu1 }
 0x27e   :  { %v2110_v14 = vpop.f32.mrb[5].mxu0  ;;  %v1859_v15 = vpop.f32.mrb[5].mxu1 }
 0x27f   :  { %v2111_v16 = vadd.f32 %v2110_v14, %v2109_v11  ;;  %v2112_v17 = vpop.f32.mrb[6].mxu0  ;;  %v1860_v18 = vpop.f32.mrb[6].mxu1 }
 0x280   :  { %v2113_v19 = vpop.f32.mrb[7].mxu0  ;;  %v1861_v20 = vpop.f32.mrb[7].mxu1 }
 0x281   :  { %v1818_v21 = vadd.f32 %v2111_v16, %v2066_v13 }
 0x283   :  { %v1858_v22 = vadd.f32 %v1857_v12, %v1818_v21 }
 0x285   :  { %1863 = vst [vmem:[%s3195_s5] sm:$0xff] %v1858_v22 }

</bundles_post_ra>
